<compile_context>
chip_gen: v7x
topology: tpu7x:2x2x1
jax: 0.10.0
libtpu: 0.0.40
codegen_flags: <defaults>
</compile_context>

<pallas_src>
import functools

import jax
import jax.numpy as jnp
from jax.experimental import pallas as pl
from jax.experimental.pallas import tpu as pltpu

_LANES = 128
_SUBLANES = 8
_DEFAULT_BLOCK_ROWS = 2048          # 2048 x 128 x 4 B = 1 MiB per f32 block
_FAST_PATH_MAX_ROWS = 8192          # 8192 x 128 x 4 B = 4 MiB resident in VMEM
_VMEM_LIMIT = 32 * 1024 * 1024      # safe scoped-VMEM cap on v5e/v6e/v7x


def _round_up(v: int, m: int) -> int:
    return ((v + m - 1) // m) * m


def _cdiv(a: int, b: int) -> int:
    return (a + b - 1) // b


def _fused_softmax_kernel(x_ref, o_ref):
    """Fast path: whole padded (rows, 128) vector resident in VMEM."""
    x = x_ref[...].astype(jnp.float32)                                    # (rows, 128)
    # Sublane-direction reduce first (elementwise VALU across vregs), then one
    # cross-lane XLU reduce of a single (1, 128) vreg.
    m = jnp.max(jnp.max(x, axis=0, keepdims=True), axis=1, keepdims=True)  # (1, 1)
    e = jnp.exp(x - m)                          # -inf padding -> exactly 0
    s = jnp.sum(jnp.sum(e, axis=0, keepdims=True), axis=1, keepdims=True)  # (1, 1)
    # EUP approximate reciprocal + one Newton step on a single scalar (free);
    # the per-element normalization is then just a vmul.
    inv = pl.reciprocal(s, approx=True)
    inv = inv * (2.0 - s * inv)
    o_ref[...] = (e * inv).astype(o_ref.dtype)


def _partial_stats_kernel(x_ref, m_ref, s_ref):
    """Tiled pass 1: per-tile, per-lane max and sum(exp(x - max)). Fully parallel."""
    x = x_ref[...].astype(jnp.float32)                     # (br, 128)
    m = jnp.max(x, axis=0, keepdims=True)                  # (1, 128) sublane reduce
    # Guard lanes that are pure -inf padding so exp(-inf - -inf) doesn't NaN.
    m_safe = jnp.where(m == -jnp.inf, jnp.float32(0.0), m)
    e = jnp.exp(x - m_safe)
    s = jnp.sum(e, axis=0, keepdims=True)                  # (1, 128)
    m_ref[...] = jnp.broadcast_to(m, (1, _SUBLANES, _LANES))
    s_ref[...] = jnp.broadcast_to(s, (1, _SUBLANES, _LANES))


def _normalize_kernel(c_ref, x_ref, o_ref):
    """Tiled pass 2: out = exp(x - c), c = max + log(sum) as an SMEM scalar."""
    c = c_ref[0, 0]
    o_ref[...] = jnp.exp(x_ref[...].astype(jnp.float32) - c).astype(o_ref.dtype)


@functools.partial(jax.jit, static_argnames=("block_rows",))
def softmax_stable(x: jax.Array, *, block_rows: int = _DEFAULT_BLOCK_ROWS) -> jax.Array:
    """Stable softmax over a 1-D vector, computed with Pallas TPU kernels."""
    assert x.ndim == 1, "SoftmaxStable expects a 1-D tensor"
    n = x.shape[0]
    assert n >= 1

    rows_needed = _round_up(max(_cdiv(n, _LANES), 1), _SUBLANES)

    # -------- Fast path: whole vector VMEM-resident, single kernel --------
    if rows_needed <= _FAST_PATH_MAX_ROWS:
        rows = rows_needed
        total = rows * _LANES
        x2d = jnp.pad(x, (0, total - n), constant_values=-jnp.inf).reshape(rows, _LANES)
        out2d = pl.pallas_call(
            _fused_softmax_kernel,
            out_shape=jax.ShapeDtypeStruct((rows, _LANES), x.dtype),
            grid_spec=pltpu.PrefetchScalarGridSpec(
                num_scalar_prefetch=0,
                grid=(1,),
                in_specs=[pl.BlockSpec((rows, _LANES), lambda i: (0, 0))],
                out_specs=pl.BlockSpec((rows, _LANES), lambda i: (0, 0)),
            ),
            compiler_params=pltpu.CompilerParams(
                dimension_semantics=("arbitrary",),
                vmem_limit_bytes=_VMEM_LIMIT),
        )(x2d)
        return out2d.reshape(total)[:n]

    # -------- Tiled path: very large vectors --------
    # Near-equal split: pads <8 rows per tile (vs up to block_rows-8 before).
    g = _cdiv(rows_needed, block_rows)
    br = _round_up(_cdiv(rows_needed, g), _SUBLANES)
    rows = g * br
    total = rows * _LANES
    x2d = jnp.pad(x, (0, total - n), constant_values=-jnp.inf).reshape(rows, _LANES)

    # Pass 1: independent per-tile partial stats; "parallel" grid axis so both
    # TensorCores of a v7x chip share the reduction (no-op on v5e/v6e).
    m3, s3 = pl.pallas_call(
        _partial_stats_kernel,
        out_shape=(
            jax.ShapeDtypeStruct((g, _SUBLANES, _LANES), jnp.float32),
            jax.ShapeDtypeStruct((g, _SUBLANES, _LANES), jnp.float32),
        ),
        grid_spec=pltpu.PrefetchScalarGridSpec(
            num_scalar_prefetch=0,
            grid=(g,),
            in_specs=[pl.BlockSpec((br, _LANES), lambda i: (i, 0))],
            out_specs=[
                pl.BlockSpec((1, _SUBLANES, _LANES), lambda i: (i, 0, 0)),
                pl.BlockSpec((1, _SUBLANES, _LANES), lambda i: (i, 0, 0)),
            ],
        ),
        compiler_params=pltpu.CompilerParams(
            dimension_semantics=("parallel",),
            vmem_limit_bytes=_VMEM_LIMIT),
    )(x2d)

    # Tiny XLA-side log-sum-exp merge of the per-tile partials.
    m_parts = m3[:, 0, :]                               # (g, 128)
    s_parts = s3[:, 0, :]                               # (g, 128)
    m_glob = jnp.max(m_parts)
    s_glob = jnp.sum(s_parts * jnp.exp(m_parts - m_glob))
    c = (m_glob + jnp.log(s_glob)).astype(jnp.float32).reshape(1, 1)

    # Pass 2: out = exp(x - c); the single scalar c rides in SMEM.
    out2d = pl.pallas_call(
        _normalize_kernel,
        out_shape=jax.ShapeDtypeStruct((rows, _LANES), x.dtype),
        grid_spec=pltpu.PrefetchScalarGridSpec(
            num_scalar_prefetch=0,
            grid=(g,),
            in_specs=[
                pl.BlockSpec(memory_space=pltpu.MemorySpace.SMEM),
                pl.BlockSpec((br, _LANES), lambda i: (i, 0)),
            ],
            out_specs=pl.BlockSpec((br, _LANES), lambda i: (i, 0)),
        ),
        compiler_params=pltpu.CompilerParams(
            dimension_semantics=("parallel",),
            vmem_limit_bytes=_VMEM_LIMIT),
    )(c, x2d)

    return out2d.reshape(total)[:n]


if __name__ == "__main__":
    key = jax.random.PRNGKey(0)
    k_small, k_mid, k_big = jax.random.split(key, 3)

    # Small 1-D input, consistent with the module's forward (vector softmax).
    x_small = jax.random.normal(k_small, (8,), dtype=jnp.float32)
    y_small = softmax_stable(x_small)
    jax.block_until_ready(y_small)
    ref_small = jax.nn.softmax(x_small)
    assert y_small.shape == x_small.shape
    assert jnp.allclose(y_small, ref_small, rtol=1e-5, atol=1e-7), (y_small, ref_small)
    assert jnp.allclose(jnp.sum(y_small), 1.0, atol=1e-5)

    # Mid-sized input: exercises padding + the single-kernel VMEM fast path.
    x_mid = jax.random.normal(k_mid, (70_000,), dtype=jnp.float32)
    y_mid = softmax_stable(x_mid)
    jax.block_until_ready(y_mid)
    ref_mid = jax.nn.softmax(x_mid)
    assert y_mid.shape == x_mid.shape
    assert jnp.allclose(y_mid, ref_mid, rtol=1e-4, atol=1e-10), "mid-case mismatch"
    assert jnp.allclose(jnp.sum(y_mid), 1.0, atol=1e-3)

    # Large input: exercises the tiled path (near-equal split, parallel partial
    # stats, log-sum-exp merge, SMEM-scalar normalize).
    x_big = jax.random.normal(k_big, (1_200_000,), dtype=jnp.float32)
    y_big = softmax_stable(x_big)
    jax.block_until_ready(y_big)
    ref_big = jax.nn.softmax(x_big)
    assert y_big.shape == x_big.shape
    assert jnp.allclose(y_big, ref_big, rtol=1e-4, atol=1e-10), "large-case mismatch"
    assert jnp.allclose(jnp.sum(y_big), 1.0, atol=1e-3)

    print("KERNEL_OK")
</pallas_src>

<mosaic_0001>
module attributes {stable_mosaic.version = 11 : i64} {
  func.func @_fused_softmax_kernel(%arg0: i32, %arg1: memref<8x128xf32, #tpu.memory_space<vmem>>, %arg2: memref<8x128xf32, #tpu.memory_space<vmem>>) attributes {dimension_semantics = [#tpu.dimension_semantics<arbitrary>], iteration_bounds = array<i64: 1>, scalar_prefetch = 0 : i64, scratch_operands = 0 : i64, tpu.core_type = #tpu.core_type<tc>, window_params = [{pipeline_mode = #tpu.pipeline_mode<synchronous>, transform_indices = @transform_0, window_bounds = array<i64: 8, 128>}, {pipeline_mode = #tpu.pipeline_mode<synchronous>, transform_indices = @transform_1, window_bounds = array<i64: 8, 128>}]} {
    %c0 = arith.constant 0 : index
    %c0_0 = arith.constant 0 : index
    %0 = vector.load %arg1[%c0, %c0_0] : memref<8x128xf32, #tpu.memory_space<vmem>>, vector<8x128xf32>
    %cst = arith.constant dense<0xFF800000> : vector<128xf32>
    %1 = vector.multi_reduction <maximumf>, %0, %cst [0] : vector<8x128xf32> to vector<128xf32>
    %2 = vector.shape_cast %1 : vector<128xf32> to vector<1x128xf32>
    %cst_1 = arith.constant dense<0xFF800000> : vector<1xf32>
    %3 = vector.multi_reduction <maximumf>, %2, %cst_1 [1] : vector<1x128xf32> to vector<1xf32>
    %4 = vector.shape_cast %3 : vector<1xf32> to vector<1x1xf32>
    %5 = vector.broadcast %4 : vector<1x1xf32> to vector<8x128xf32>
    %6 = arith.subf %0, %5 : vector<8x128xf32>
    %7 = math.exp %6 : vector<8x128xf32>
    %cst_2 = arith.constant dense<0.000000e+00> : vector<128xf32>
    %8 = vector.multi_reduction <add>, %7, %cst_2 [0] : vector<8x128xf32> to vector<128xf32>
    %9 = vector.shape_cast %8 : vector<128xf32> to vector<1x128xf32>
    %cst_3 = arith.constant dense<0.000000e+00> : vector<1xf32>
    %10 = vector.multi_reduction <add>, %9, %cst_3 [1] : vector<1x128xf32> to vector<1xf32>
    %11 = vector.shape_cast %10 : vector<1xf32> to vector<1x1xf32>
    %12 = tpu.reciprocal %11 {approx = true} : vector<1x1xf32> -> vector<1x1xf32>
    %13 = arith.mulf %11, %12 : vector<1x1xf32>
    %cst_4 = arith.constant 2.000000e+00 : f32
    %14 = vector.broadcast %cst_4 : f32 to vector<1x1xf32>
    %15 = arith.subf %14, %13 : vector<1x1xf32>
    %16 = arith.mulf %12, %15 : vector<1x1xf32>
    %17 = vector.broadcast %16 : vector<1x1xf32> to vector<8x128xf32>
    %18 = arith.mulf %7, %17 : vector<8x128xf32>
    %c0_5 = arith.constant 0 : index
    %c0_6 = arith.constant 0 : index
    %19 = vector.load %arg2[%c0_5, %c0_6] : memref<8x128xf32, #tpu.memory_space<vmem>>, vector<8x128xf32>
    tpu.vector_store %arg2[%c0_5, %c0_6], %18 {strides = array<i32>} : memref<8x128xf32, #tpu.memory_space<vmem>>, vector<8x128xf32>,
    return
  }
  func.func @transform_0(%arg0: i32) -> (i32, i32) {
    %c0_i32 = arith.constant 0 : i32
    %c0_i32_0 = arith.constant 0 : i32
    %c0_i32_1 = arith.constant 0 : i32
    return %c0_i32, %c0_i32_0 : i32, i32
  }
  func.func @transform_1(%arg0: i32) -> (i32, i32) {
    %c0_i32 = arith.constant 0 : i32
    %c0_i32_0 = arith.constant 0 : i32
    %c0_i32_1 = arith.constant 0 : i32
    return %c0_i32, %c0_i32_0 : i32, i32
  }
}

</mosaic_0001>

<bundles_post_ra>
// kernel: softmax_stable.1
= control target key start
LH: loop header
LB: loop body
LE: loop exit
PB: predicated region body
PF: predicated region fallthrough
CT: control target
= control target key end

     0   :  { %s58_s0 = inlined_call_operand.vmem [shape: f32[8,128], index: 0, kind: input, shape index: {}]   ;;  %s59_s1 = inlined_call_operand.vmem [shape: f32[8,128], index: 1, kind: output, shape index: {}]  }
   0x1   :  { %v8_v0 = vld [vmem:[%s58_s0] sm:$0xff] }
   0x2   :  { %v9_v1 = vrot.slane %v8_v0, 4 }
   0x4   :  { %v10_v2 = vmax.f32 %v8_v0, %v9_v1 }
   0x6   :  { %v11_v3 = vrot.slane %v10_v2, 2 }
   0x8   :  { %v12_v4 = vmax.f32 %v10_v2, %v11_v3 }
   0xa   :  { %v13_v5 = vrot.slane %v12_v4, 1 }
   0xc   :  { %v14_v6 = vmax.f32 %v12_v4, %v13_v5 }
   0xe   :  { %15 = vmax.xlane.f32.xlu0 %v14_v6 }
  0x9b   :  { %v16_v7 = vpop.xlane.xlu0 %15 }
  0x9c   :  { %v17_v8 = vsub.f32 %v8_v0, %v16_v7 }
  0x9e   :  { %v18_v9 = vmul.f32 1.442695, %v17_v8 }
  0xa0   :  { %38 = vpow2.f32 %v18_v9 }
  0xaa   :  { %v39_v10 = vpop.eup %38 }
  0xab   :  { %v20_v11 = vrot.slane %v39_v10, 4 }
  0xad   :  { %v21_v12 = vadd.f32 %v39_v10, %v20_v11 }
  0xaf   :  { %v22_v13 = vrot.slane %v21_v12, 2 }
  0xb1   :  { %v23_v14 = vadd.f32 %v22_v13, %v21_v12 }
  0xb3   :  { %v24_v15 = vrot.slane %v23_v14, 1 }
  0xb5   :  { %v25_v16 = vadd.f32 %v24_v15, %v23_v14 }
  0xb7   :  { %26 = vadd.xlane.f32.xlu0 %v25_v16 }
 0x144   :  { %v27_v17 = vpop.xlane.xlu0 %26 }
 0x145   :  { %40 = vrcp.f32 %v27_v17 }
 0x14f   :  { %v41_v18 = vpop.eup %40 }
 0x150   :  { %v29_v19 = vmul.f32 %v41_v18, %v27_v17 }
 0x152   :  { %v30_v20 = vsub.f32 2.0, %v29_v19 }
 0x154   :  { %v31_v21 = vmul.f32 %v41_v18, %v30_v20 }
 0x156   :  { %v32_v22 = vmul.f32 %v39_v10, %v31_v21 }
 0x158   :  { %33 = vst [vmem:[%s59_s1] sm:$0xff] %v32_v22 }

</bundles_post_ra>
